<compile_context>
chip_gen: v5e
topology: v5e:2x2
jax: 0.10.0
libtpu: 0.0.40
codegen_flags: <defaults>
</compile_context>

<pallas_src>
import math
import functools

import jax
import jax.numpy as jnp
from jax.experimental import pallas as pl
from jax.experimental.pallas import tpu as pltpu

SELU_ALPHA = 1.6732632423543772
SELU_SCALE = 1.0507009873554805

_LANE = 128        # hidden feature dims are zero-padded to multiples of this
_ROW_ALIGN = 8     # sublane alignment for the batch tile
_VREG_THREAD_ELEMS = 128 * 128   # thread activations through vregs below this


def _round_up(x, m):
    return (x + m - 1) // m * m


def _vmem_capacity_bytes():
    """Per-TensorCore VMEM capacity; conservative 64 MiB fallback (v7x)."""
    try:
        return int(pltpu.get_tpu_info().vmem_capacity_bytes)
    except Exception:
        return 64 << 20


def _selu_f32(y):
    # F.selu: scale * (max(0, y) + min(0, alpha * (exp(y) - 1)))
    # exp only on the clamped negative branch -> no inf on the dead branch.
    neg = SELU_ALPHA * (jnp.exp(jnp.minimum(y, 0.0)) - 1.0)
    return SELU_SCALE * jnp.where(y > 0.0, y, neg)


def _snn_fused_kernel(*refs, num_layers, use_scratch):
    """Fused MLP forward for one batch tile.

    refs = (x_ref, w0, b0, ..., w_{L-1}, b_{L-1}, o_ref[, bufA, bufB])

    x_ref : (TM, In)          bf16   (streamed batch tile)
    w_i   : (InP_i, OutP_i)   bf16   (whole-array VMEM resident)
    b_i   : (1, OutP_i)       f32    (whole-array VMEM resident)
    o_ref : (TM, Out)         out_dtype
    bufs  : two (TM, HidP) bf16 VMEM scratch buffers (only if use_scratch)
    """
    x_ref = refs[0]
    wb = refs[1:1 + 2 * num_layers]
    o_ref = refs[1 + 2 * num_layers]
    bufs = refs[2 + 2 * num_layers:]

    h = x_ref[...]
    for i in range(num_layers):
        w_ref = wb[2 * i]
        b_ref = wb[2 * i + 1]
        # bf16 x bf16 -> f32 accumulate on the MXU.
        y = jnp.dot(h, w_ref[...], preferred_element_type=jnp.float32)
        y = y + b_ref[...]                        # (1, Out) broadcast, f32
        if i == num_layers - 1:
            o_ref[...] = y.astype(o_ref.dtype)
        else:
            y = _selu_f32(y)
            # AlphaDropout(0.0) == identity; nothing to do.
            if use_scratch:
                # NOTE: all hidden widths are identical in this module, so a
                # full-buffer store is shape-safe.
                bufs[i % 2][...] = y.astype(bufs[i % 2].dtype)
                h = bufs[i % 2][...]
            else:
                h = y.astype(jnp.bfloat16)        # stays in vregs


class SelfNormalizingNetworkPallas:
    """JAX/Pallas port of the PyTorch SelfNormalizingNetwork forward pass."""

    def __init__(self, input_size, output_size, hidden_size=-1,
                 num_hidden_layers=0, hidden_bias=True, output_bias=False,
                 output_activation=None, dropout=0.0, *, key,
                 out_dtype=jnp.float32):
        assert dropout == 0.0, "only the dropout=0 (identity AlphaDropout) case"
        self.input_size = input_size
        self.output_size = output_size
        self.hidden_size = hidden_size
        self.num_hidden_layers = num_hidden_layers
        self.hidden_bias = hidden_bias
        # `output_bias` is accepted but IGNORED, exactly like the PyTorch
        # reference (its last layer also uses hidden_bias).
        self.output_bias = output_bias
        self.output_activation = output_activation
        self.out_dtype = out_dtype

        self.num_layers = num_hidden_layers + 1
        dims = [input_size] + [hidden_size] * num_hidden_layers + [output_size]
        # Only hidden dims are padded (to lane multiples); the input/output
        # feature dims use full-extent blocks, so no wrapper-side pad/slice.
        dims_pad = list(dims)
        for i in range(1, self.num_layers):
            dims_pad[i] = _round_up(dims[i], _LANE)
        self.dims = dims
        self.dims_pad = dims_pad

        self.params = []          # unpadded f32 (w, b) -- for reference check
        self.padded_params = []   # (w_pad bf16 (InP,OutP), b_pad f32 (1,OutP))
        for i in range(self.num_layers):
            d_in, d_out = dims[i], dims[i + 1]
            key, wkey = jax.random.split(key)
            std = math.sqrt(1.0 / d_in)
            # stored as (in, out) == PyTorch weight.T so the hot path is x @ W
            w = std * jax.random.normal(wkey, (d_in, d_out), jnp.float32)
            b = jnp.zeros((d_out,), jnp.float32)  # zero even if bias disabled
            self.params.append((w, b))

            in_p, out_p = dims_pad[i], dims_pad[i + 1]
            w_pad = jnp.zeros((in_p, out_p), jnp.float32).at[:d_in, :d_out].set(w)
            b_pad = jnp.zeros((1, out_p), jnp.float32).at[0, :d_out].set(b)
            self.padded_params.append((w_pad.astype(jnp.bfloat16), b_pad))

        self.weight_bytes = sum(
            int(w.size) * w.dtype.itemsize + int(b.size) * b.dtype.itemsize
            for w, b in self.padded_params)

    def __call__(self, x):
        B, In = x.shape
        assert In == self.input_size
        out_dim = self.output_size
        out_bytes = jnp.dtype(self.out_dtype).itemsize
        hid_pad = max(self.dims_pad[1:-1]) if self.num_layers > 1 else 0

        # ---- Generation-aware VMEM budgeting ---------------------------------
        vmem_cap = _vmem_capacity_bytes()           # per-TC (64 MiB v7x, 128 MiB v5e/v6e)
        vmem_budget = int(vmem_cap * 0.85)

        if self.weight_bytes > vmem_budget:
            # TODO(synk): fall back to a K/N-tiled "arbitrary" grid axis with an
            # f32 accumulator (weight streaming) when panels exceed per-TC VMEM.
            raise NotImplementedError(
                f"resident weight panels ({self.weight_bytes/2**20:.1f} MiB) exceed "
                f"the per-TensorCore VMEM budget ({vmem_budget/2**20:.1f} MiB)")

        # Batch tile: larger on 128-MiB chips, tighter on v7x's 64 MiB/TC.
        tm_max = 512 if vmem_cap >= (96 << 20) else 256
        tm = min(_round_up(B, _ROW_ALIGN), tm_max)

        def _act_bytes(tm_):
            # double-buffered x and out tiles + two bf16 hidden scratch buffers
            return (2 * tm_ * In * 2
                    + 2 * tm_ * out_dim * out_bytes
                    + 2 * tm_ * hid_pad * 2)

        while tm > _ROW_ALIGN and self.weight_bytes + _act_bytes(tm) > vmem_budget:
            tm = _round_up(max(tm // 2, _ROW_ALIGN), _ROW_ALIGN)

        grid = (pl.cdiv(B, tm),)   # ragged last tile handled by Pallas masking
        b_total = grid[0] * tm

        # Cast once to bf16 (no materialized pad of the activation).
        x_bf = x if x.dtype == jnp.bfloat16 else x.astype(jnp.bfloat16)

        # Thread small activation tiles through vregs; use VMEM ping-pong
        # scratch for large tiles to bound live ranges.
        use_scratch = (self.num_layers > 1
                       and tm * hid_pad > _VREG_THREAD_ELEMS)

        # ---- Specs ------------------------------------------------------------
        in_specs = [pl.BlockSpec((tm, In), lambda i: (i, 0))]
        operands = [x_bf]
        # Whole-array VMEM residency: single copy, DMA'd once for the grid.
        resident = pl.BlockSpec(memory_space=pltpu.MemorySpace.VMEM)
        for (w_p, b_p) in self.padded_params:
            in_specs += [resident, resident]
            operands += [w_p, b_p]
        out_specs = pl.BlockSpec((tm, out_dim), lambda i: (i, 0))

        scratch = []
        if use_scratch:
            scratch = [pltpu.VMEM((tm, hid_pad), jnp.bfloat16),
                       pltpu.VMEM((tm, hid_pad), jnp.bfloat16)]

        # Advisory cost estimate for XLA's scheduler.
        flops = 0
        transcendentals = 0
        for i in range(self.num_layers):
            flops += 2 * b_total * self.dims_pad[i] * self.dims_pad[i + 1]
            if i != self.num_layers - 1:
                transcendentals += b_total * self.dims_pad[i + 1]
        bytes_accessed = (B * In * 2 + self.weight_bytes
                          + B * out_dim * out_bytes)

        vmem_needed = self.weight_bytes + _act_bytes(tm)
        vmem_limit = int(min(max(int(vmem_needed * 1.25) + (2 << 20), 16 << 20),
                             vmem_budget))

        kernel = functools.partial(_snn_fused_kernel,
                                   num_layers=self.num_layers,
                                   use_scratch=use_scratch)
        out = pl.pallas_call(
            kernel,
            out_shape=jax.ShapeDtypeStruct((B, out_dim), self.out_dtype),
            grid=grid,
            in_specs=in_specs,
            out_specs=out_specs,
            scratch_shapes=scratch,
            compiler_params=pltpu.CompilerParams(
                # Megacore batch split on v7x; each TC holds its own copy of
                # the resident weights, hence the per-TC budget above.
                dimension_semantics=("parallel",),
                vmem_limit_bytes=vmem_limit),
            cost_estimate=pl.CostEstimate(
                flops=flops,
                transcendentals=transcendentals,
                bytes_accessed=bytes_accessed),
        )(*operands)

        if self.output_activation is not None:
            out = self.output_activation(out)
        return out


def _reference_forward(x, params, num_hidden_layers):
    """Pure-jnp reference mirroring the kernel math (bf16 dot, f32 SELU)."""
    h = x.astype(jnp.bfloat16)
    y = None
    for i, (w, b) in enumerate(params):
        y = jnp.dot(h, w.astype(jnp.bfloat16),
                    preferred_element_type=jnp.float32) + b
        if i != num_hidden_layers:
            y = _selu_f32(y)
            h = y.astype(jnp.bfloat16)
    return y


if __name__ == "__main__":
    key = jax.random.PRNGKey(0)
    key, xkey, pkey = jax.random.split(key, 3)

    batch = 8
    input_size = 32
    hidden_size = 64
    output_size = 16
    num_hidden_layers = 2

    net = SelfNormalizingNetworkPallas(
        input_size=input_size,
        output_size=output_size,
        hidden_size=hidden_size,
        num_hidden_layers=num_hidden_layers,
        hidden_bias=True,
        output_bias=False,
        output_activation=None,
        dropout=0.0,
        key=pkey,
    )

    x = jax.random.normal(xkey, (batch, input_size), jnp.float32)

    out = net(x)
    out = jax.block_until_ready(out)

    ref = _reference_forward(x, net.params, num_hidden_layers)
    assert out.shape == (batch, output_size), out.shape
    assert jnp.allclose(out.astype(jnp.float32), ref, atol=5e-3, rtol=5e-3), float(
        jnp.max(jnp.abs(out.astype(jnp.float32) - ref)))

    print("KERNEL_OK")
</pallas_src>

<mosaic_0001>
module attributes {stable_mosaic.version = 11 : i64} {
  func.func @_snn_fused_kernel(%arg0: i32, %arg1: memref<8x32xbf16, #tpu.memory_space<vmem>>, %arg2: memref<32x128xbf16, #tpu.memory_space<vmem>>, %arg3: memref<1x128xf32, #tpu.memory_space<vmem>>, %arg4: memref<128x128xbf16, #tpu.memory_space<vmem>>, %arg5: memref<1x128xf32, #tpu.memory_space<vmem>>, %arg6: memref<128x16xbf16, #tpu.memory_space<vmem>>, %arg7: memref<1x16xf32, #tpu.memory_space<vmem>>, %arg8: memref<8x16xf32, #tpu.memory_space<vmem>>) attributes {dimension_semantics = [#tpu.dimension_semantics<parallel>], iteration_bounds = array<i64: 1>, scalar_prefetch = 0 : i64, scratch_operands = 0 : i64, tpu.core_type = #tpu.core_type<tc>, window_params = [{transform_indices = @transform_0, window_bounds = array<i64: 8, 32>}, {pipeline_mode = #tpu.pipeline_mode<synchronous>, transform_indices = @transform_1, window_bounds = array<i64: 32, 128>}, {pipeline_mode = #tpu.pipeline_mode<synchronous>, transform_indices = @transform_2, window_bounds = array<i64: 1, 128>}, {pipeline_mode = #tpu.pipeline_mode<synchronous>, transform_indices = @transform_3, window_bounds = array<i64: 128, 128>}, {pipeline_mode = #tpu.pipeline_mode<synchronous>, transform_indices = @transform_4, window_bounds = array<i64: 1, 128>}, {pipeline_mode = #tpu.pipeline_mode<synchronous>, transform_indices = @transform_5, window_bounds = array<i64: 128, 16>}, {pipeline_mode = #tpu.pipeline_mode<synchronous>, transform_indices = @transform_6, window_bounds = array<i64: 1, 16>}, {transform_indices = @transform_7, window_bounds = array<i64: 8, 16>}]} {
    %c0 = arith.constant 0 : index
    %c0_0 = arith.constant 0 : index
    %0 = vector.load %arg1[%c0, %c0_0] : memref<8x32xbf16, #tpu.memory_space<vmem>>, vector<8x32xbf16>
    %c0_1 = arith.constant 0 : index
    %c0_2 = arith.constant 0 : index
    %1 = vector.load %arg2[%c0_1, %c0_2] : memref<32x128xbf16, #tpu.memory_space<vmem>>, vector<32x128xbf16>
    %cst = arith.constant dense<0.000000e+00> : vector<8x128xf32>
    %2 = tpu.matmul %0, %1, %cst {dimension_numbers = #tpu.dot_dimension_numbers<[1], [0], [0], [1], [0, 0, 1, 1], [], []>} : vector<8x32xbf16>, vector<32x128xbf16>, vector<8x128xf32> -> vector<8x128xf32>
    %c0_3 = arith.constant 0 : index
    %c0_4 = arith.constant 0 : index
    %3 = vector.load %arg3[%c0_3, %c0_4] : memref<1x128xf32, #tpu.memory_space<vmem>>, vector<1x128xf32>
    %4 = vector.broadcast %3 : vector<1x128xf32> to vector<8x128xf32>
    %5 = arith.addf %2, %4 : vector<8x128xf32>
    %cst_5 = arith.constant 0.000000e+00 : f32
    %6 = vector.broadcast %cst_5 : f32 to vector<8x128xf32>
    %7 = arith.minimumf %5, %6 : vector<8x128xf32>
    %8 = math.exp %7 : vector<8x128xf32>
    %cst_6 = arith.constant 1.000000e+00 : f32
    %9 = vector.broadcast %cst_6 : f32 to vector<8x128xf32>
    %10 = arith.subf %8, %9 : vector<8x128xf32>
    %cst_7 = arith.constant 1.67326319 : f32
    %11 = vector.broadcast %cst_7 : f32 to vector<8x128xf32>
    %12 = arith.mulf %11, %10 : vector<8x128xf32>
    %cst_8 = arith.constant 0.000000e+00 : f32
    %13 = vector.broadcast %cst_8 : f32 to vector<8x128xf32>
    %14 = arith.cmpf ogt, %5, %13 : vector<8x128xf32>
    %15 = arith.select %14, %5, %12 : vector<8x128xi1>, vector<8x128xf32>
    %cst_9 = arith.constant 1.05070102 : f32
    %16 = vector.broadcast %cst_9 : f32 to vector<8x128xf32>
    %17 = arith.mulf %16, %15 : vector<8x128xf32>
    %18 = arith.truncf %17 : vector<8x128xf32> to vector<8x128xbf16>
    %c0_10 = arith.constant 0 : index
    %c0_11 = arith.constant 0 : index
    %19 = vector.load %arg4[%c0_10, %c0_11] : memref<128x128xbf16, #tpu.memory_space<vmem>>, vector<128x128xbf16>
    %cst_12 = arith.constant dense<0.000000e+00> : vector<8x128xf32>
    %20 = tpu.matmul %18, %19, %cst_12 {dimension_numbers = #tpu.dot_dimension_numbers<[1], [0], [0], [1], [0, 0, 1, 1], [], []>} : vector<8x128xbf16>, vector<128x128xbf16>, vector<8x128xf32> -> vector<8x128xf32>
    %c0_13 = arith.constant 0 : index
    %c0_14 = arith.constant 0 : index
    %21 = vector.load %arg5[%c0_13, %c0_14] : memref<1x128xf32, #tpu.memory_space<vmem>>, vector<1x128xf32>
    %22 = vector.broadcast %21 : vector<1x128xf32> to vector<8x128xf32>
    %23 = arith.addf %20, %22 : vector<8x128xf32>
    %cst_15 = arith.constant 0.000000e+00 : f32
    %24 = vector.broadcast %cst_15 : f32 to vector<8x128xf32>
    %25 = arith.minimumf %23, %24 : vector<8x128xf32>
    %26 = math.exp %25 : vector<8x128xf32>
    %cst_16 = arith.constant 1.000000e+00 : f32
    %27 = vector.broadcast %cst_16 : f32 to vector<8x128xf32>
    %28 = arith.subf %26, %27 : vector<8x128xf32>
    %cst_17 = arith.constant 1.67326319 : f32
    %29 = vector.broadcast %cst_17 : f32 to vector<8x128xf32>
    %30 = arith.mulf %29, %28 : vector<8x128xf32>
    %cst_18 = arith.constant 0.000000e+00 : f32
    %31 = vector.broadcast %cst_18 : f32 to vector<8x128xf32>
    %32 = arith.cmpf ogt, %23, %31 : vector<8x128xf32>
    %33 = arith.select %32, %23, %30 : vector<8x128xi1>, vector<8x128xf32>
    %cst_19 = arith.constant 1.05070102 : f32
    %34 = vector.broadcast %cst_19 : f32 to vector<8x128xf32>
    %35 = arith.mulf %34, %33 : vector<8x128xf32>
    %36 = arith.truncf %35 : vector<8x128xf32> to vector<8x128xbf16>
    %c0_20 = arith.constant 0 : index
    %c0_21 = arith.constant 0 : index
    %37 = vector.load %arg6[%c0_20, %c0_21] : memref<128x16xbf16, #tpu.memory_space<vmem>>, vector<128x16xbf16>
    %cst_22 = arith.constant dense<0.000000e+00> : vector<8x16xf32>
    %38 = tpu.matmul %36, %37, %cst_22 {dimension_numbers = #tpu.dot_dimension_numbers<[1], [0], [0], [1], [0, 0, 1, 1], [], []>} : vector<8x128xbf16>, vector<128x16xbf16>, vector<8x16xf32> -> vector<8x16xf32>
    %c0_23 = arith.constant 0 : index
    %c0_24 = arith.constant 0 : index
    %39 = vector.load %arg7[%c0_23, %c0_24] : memref<1x16xf32, #tpu.memory_space<vmem>>, vector<1x16xf32>
    %40 = vector.broadcast %39 : vector<1x16xf32> to vector<8x16xf32>
    %41 = arith.addf %38, %40 : vector<8x16xf32>
    %c0_25 = arith.constant 0 : index
    %c0_26 = arith.constant 0 : index
    %42 = vector.load %arg8[%c0_25, %c0_26] : memref<8x16xf32, #tpu.memory_space<vmem>>, vector<8x16xf32>
    tpu.vector_store %arg8[%c0_25, %c0_26], %41 {strides = array<i32>} : memref<8x16xf32, #tpu.memory_space<vmem>>, vector<8x16xf32>,
    return
  }
  func.func @transform_0(%arg0: i32) -> (i32, i32) {
    %c0_i32 = arith.constant 0 : i32
    %c0_i32_0 = arith.constant 0 : i32
    return %arg0, %c0_i32 : i32, i32
  }
  func.func @transform_1(%arg0: i32) -> (i32, i32) {
    %c0_i32 = arith.constant 0 : i32
    %c0_i32_0 = arith.constant 0 : i32
    %c0_i32_1 = arith.constant 0 : i32
    return %c0_i32, %c0_i32_0 : i32, i32
  }
  func.func @transform_2(%arg0: i32) -> (i32, i32) {
    %c0_i32 = arith.constant 0 : i32
    %c0_i32_0 = arith.constant 0 : i32
    %c0_i32_1 = arith.constant 0 : i32
    return %c0_i32, %c0_i32_0 : i32, i32
  }
  func.func @transform_3(%arg0: i32) -> (i32, i32) {
    %c0_i32 = arith.constant 0 : i32
    %c0_i32_0 = arith.constant 0 : i32
    %c0_i32_1 = arith.constant 0 : i32
    return %c0_i32, %c0_i32_0 : i32, i32
  }
  func.func @transform_4(%arg0: i32) -> (i32, i32) {
    %c0_i32 = arith.constant 0 : i32
    %c0_i32_0 = arith.constant 0 : i32
    %c0_i32_1 = arith.constant 0 : i32
    return %c0_i32, %c0_i32_0 : i32, i32
  }
  func.func @transform_5(%arg0: i32) -> (i32, i32) {
    %c0_i32 = arith.constant 0 : i32
    %c0_i32_0 = arith.constant 0 : i32
    %c0_i32_1 = arith.constant 0 : i32
    return %c0_i32, %c0_i32_0 : i32, i32
  }
  func.func @transform_6(%arg0: i32) -> (i32, i32) {
    %c0_i32 = arith.constant 0 : i32
    %c0_i32_0 = arith.constant 0 : i32
    %c0_i32_1 = arith.constant 0 : i32
    return %c0_i32, %c0_i32_0 : i32, i32
  }
  func.func @transform_7(%arg0: i32) -> (i32, i32) {
    %c0_i32 = arith.constant 0 : i32
    %c0_i32_0 = arith.constant 0 : i32
    return %arg0, %c0_i32 : i32, i32
  }
}

</mosaic_0001>

<bundles_post_ra>
// kernel: tpu_custom_call.1
= control target key start
LH: loop header
LB: loop body
LE: loop exit
PB: predicated region body
PF: predicated region fallthrough
CT: control target
= control target key end

     0   :  { %12 = vsyncpa [#allocation3], 0  ;;  %s547_s0 = inlined_call_operand.vmem [shape: bf16[8,32], index: 0, kind: input, shape index: {}]   ;;  %s548_s1 = inlined_call_operand.hbm [shape: bf16[32,128], index: 1, kind: input, shape index: {}]   ;;  %s549_s2 = inlined_call_operand.vmem [shape: f32[1,128], index: 2, kind: input, shape index: {}]   ;;  %s550_s3 = inlined_call_operand.vmem [shape: bf16[128,128], index: 3, kind: input, shape index: {}]   ;;  %s551_s4 = inlined_call_operand.vmem [shape: f32[1,128], index: 4, kind: input, shape index: {}]   ;;  %s552_s5 = inlined_call_operand.vmem [shape: bf16[128,16], index: 5, kind: input, shape index: {}]   ;;  %s553_s6 = inlined_call_operand.vmem [shape: f32[1,16], index: 6, kind: input, shape index: {}]   ;;  %s554_s7 = inlined_call_operand.hbm [shape: f32[8,16], index: 7, kind: output, shape index: {}]  }
   0x1   :  { %13 = vsyncpa [#allocation4], 0  ;;  %s20_s26 = sshll.u32 %s548_s1, 4  ;;  %s437_s27 = smov [#allocation2]   ;;  %s21_s26 = int_to_ptr.hbm [resolvable:$true] %s20_s26 }
   0x2   :  { %s22_s28 = sshll.u32 %s437_s27, 4  ;;  %s438_s29 = smov 64   ;;  %s23_s28 = int_to_ptr.vmem [resolvable:$true] %s22_s28 }
   0x3   :  { %s439_s30 = smov 4  }
   0x4   :  { %28 = dma.hbm_to_vmem [thread:$0]  %s21_s26, 256, %s23_s28, [#allocation3], %s438_s29, %s438_s29, %s439_s30  }
   0x5   :  { %433 = dma.done.wait [#allocation3], 256  }
   0x6   :  { %434 = vsyncadd [#allocation3], 4294967040  ;;  %v357_v0 = vld [vmem:[#allocation2 + $0x8] sm:$0xff]  ;;  %v365_v1 = vld [vmem:[%s550_s3 + $0x38] sm:$0xff]  ;;  %vm65_vm0 = vcmask 261120   ;;  %s440_s19 = smov [#allocation5]  }
   0x7   :  { %75 = vmatpush.bf16.msra.mxu0 %v357_v0  ;;  %v356_v2 = vld [vmem:[#allocation2] sm:$0xff]  ;;  %159 = vmatpush.bf16.msra.mxu1 %v365_v1  ;;  %v364_v3 = vld [vmem:[%s550_s3 + $0x30] sm:$0xff]  ;;  %v363_v5 = vld [vmem:[%s550_s3 + $0x28] sm:$0xff]  ;;  %s271_s21 = sshll.u32 %s554_s7, 4  ;;  %vm262_vm3 = vcmask 130048   ;;  %s272_s21 = int_to_ptr.hbm [resolvable:$true] %s271_s21 }
   0x8   :  { %v44_v4 = vld [vmem:[%s547_s0] sm:$0xf]  ;;  %v361_v7 = vld [vmem:[%s550_s3 + $0x18] sm:$0xff]  ;;  %v360_v8 = vld [vmem:[%s550_s3 + $0x10] sm:$0xff] }
   0x9   :  { %v362_v6 = vld [vmem:[%s550_s3 + $0x20] sm:$0xff]  ;;  %v359_v9 = vld [vmem:[%s550_s3 + $0x8] sm:$0xff]  ;;  %v373_v11 = vld [vmem:[%s552_s5 + $0x38] sm:$0xff] }
   0xa   :  { %v358_v10 = vld [vmem:[%s550_s3] sm:$0xff]  ;;  %249 = vmatpush.bf16.msra.mxu2 %v373_v11  ;;  %v372_v12 = vld [vmem:[%s552_s5 + $0x30] sm:$0xff]  ;;  %v371_v25 = vld [vmem:[%s552_s5 + $0x28] sm:$0xff] }
   0xb   :  { %76 = vmatpush.bf16.msra.mxu0 %v356_v2  ;;  %160 = vmatpush.bf16.msra.mxu1 %v364_v3  ;;  %v378_v13 = vld [vmem:[%s549_s2] ss:$0 sm:$0xff]  ;;  %v369_v27 = vld [vmem:[%s552_s5 + $0x18] sm:$0xff]  ;;  %v368_v28 = vld [vmem:[%s552_s5 + $0x10] sm:$0xff] }
   0xc   :  { %v370_v26 = vld [vmem:[%s552_s5 + $0x20] sm:$0xff]  ;;  %v367_v29 = vld [vmem:[%s552_s5 + $0x8] sm:$0xff] }
   0xd   :  { %v366_v30 = vld [vmem:[%s552_s5] sm:$0xff] }
   0xe   :  { %289 = vmatmul.msk.bf16.vlgmr.msra.gmra.mxu0 %vm65_vm0, %v44_v4  ;;  %250 = vmatpush.bf16.msra.mxu2 %v372_v12  ;;  %v379_v31 = vld [vmem:[%s551_s4] ss:$0 sm:$0xff]  ;;  %s269_s4 = sshll.u32 %s440_s19, 4  ;;  %s270_s4 = int_to_ptr.vmem [resolvable:$true] %s269_s4 }
   0xf   :  { %161 = vmatpush.bf16.msra.mxu1 %v363_v5  ;;  %v380_v43 = vld [vmem:[%s553_s6] ss:$0 sm:$0xff] }
  0x12   :  { %251 = vmatpush.bf16.msra.mxu2 %v371_v25 }
  0x13   :  { %162 = vmatpush.bf16.msra.mxu1 %v362_v6 }
  0x16   :  { %252 = vmatpush.bf16.msra.mxu2 %v370_v26 }
  0x17   :  { %163 = vmatpush.bf16.msra.mxu1 %v361_v7 }
  0x1a   :  { %253 = vmatpush.bf16.msra.mxu2 %v369_v27 }
  0x1b   :  { %164 = vmatpush.bf16.msra.mxu1 %v360_v8 }
  0x1e   :  { %254 = vmatpush.bf16.msra.mxu2 %v368_v28 }
  0x1f   :  { %165 = vmatpush.bf16.msra.mxu1 %v359_v9 }
  0x22   :  { %255 = vmatpush.bf16.msra.mxu2 %v367_v29 }
  0x23   :  { %166 = vmatpush.bf16.msra.mxu1 %v358_v10 }
  0x26   :  { %256 = vmatpush.bf16.msra.mxu2 %v366_v30 }
  0x8b   :  { %v78_v14 = vpop.f32.mrf.mxu0 }
  0x8c   :  { %v79_v15 = vadd.f32 %v378_v13, %v78_v14 }
  0x8e   :  { %v82_v16 = vmin.f32 %v79_v15, 0.0  ;;  %vm87_vm1 = vcmp.gt.f32.partialorder %v79_v15, 0.0 }
  0x90   :  { %v83_v17 = vmul.f32 1.442695, %v82_v16 }
  0x92   :  { %381 = vpow2.f32 %v83_v17 }
  0x93   :  { %v80_v18 = vpop.f32.mrf.mxu0 }
  0x98   :  { %v382_v19 = vpop.eup %381 }
  0x99   :  { %v290_v20 = vadd.f32 -1.0, %v382_v19 }
  0x9b   :  { %v86_v21 = vmul.f32 1.6732632, %v290_v20 }
  0x9d   :  { %v88_v22 = vsel %vm87_vm1, %v79_v15, %v86_v21 }
  0x9e   :  { %v89_v23 = vmul.f32 1.050701, %v88_v22 }
  0xa0   :  { %v90_v24 = vpack.c.bf16 %v89_v23, %v89_v23 }
  0xa2   :  { %167 = vmatmul.bf16.vlgmr.msra.gmra.mxu1 %v90_v24 }
 0x11f   :  { %v168_v32 = vpop.f32.mrf.mxu1 }
 0x120   :  { %v169_v33 = vadd.f32 %v379_v31, %v168_v32 }
 0x122   :  { %v172_v34 = vmin.f32 %v169_v33, 0.0  ;;  %vm177_vm2 = vcmp.gt.f32.partialorder %v169_v33, 0.0 }
 0x124   :  { %v173_v35 = vmul.f32 1.442695, %v172_v34 }
 0x126   :  { %383 = vpow2.f32 %v173_v35 }
 0x127   :  { %v170_v36 = vpop.f32.mrf.mxu1 }
 0x12c   :  { %v384_v37 = vpop.eup %383 }
 0x12d   :  { %v323_v38 = vadd.f32 -1.0, %v384_v37 }
 0x12f   :  { %v176_v39 = vmul.f32 1.6732632, %v323_v38 }
 0x131   :  { %v178_v40 = vsel %vm177_vm2, %v169_v33, %v176_v39 }
 0x132   :  { %v179_v41 = vmul.f32 1.050701, %v178_v40 }
 0x134   :  { %v180_v42 = vpack.c.bf16 %v179_v41, %v179_v41 }
 0x136   :  { %257 = vmatmul.bf16.vlgmr.msra.gmra.mxu2 %v180_v42 }
 0x1b9   :  { %v258_v44 = vpop.f32.mrf.mxu2 }
 0x1ba   :  { %v259_v45 = vadd.f32 %v380_v43, %v258_v44 }
 0x1bc   :  { %263 = vst.msk [vmem:[#allocation5] sm:$0xff] %vm262_vm3, %v259_v45 }
 0x1bd   :  { %274 = dma.vmem_to_hbm [thread:$0]  %s270_s4, 128, %s272_s21, [#allocation4]  }
 0x1c1   :  { %v260_v46 = vpop.f32.mrf.mxu2 }
 0x1c2   :  { %435 = dma.done.wait [#allocation4], 128  }
 0x1c3   :  { %436 = vsyncadd [#allocation4], 4294967168 }
 0x1c4   :  { %279 = vsyncpa [#allocation3], 1 }
 0x1c5   :  { %280 = vsyncpa [#allocation4], 1 }

</bundles_post_ra>
